<compile_context>
chip_gen: v7x
topology: tpu7x:2x2x1
jax: 0.10.0
libtpu: 0.0.40
codegen_flags: <defaults>
</compile_context>

<pallas_src>
import functools

import jax
import jax.numpy as jnp
from jax.experimental import pallas as pl
from jax.experimental.pallas import tpu as pltpu


def _conv_bn_silu_kernel(x_ref, w_ref, shift_ref, o_ref, *, k):
    # x_ref:     (1, Hp, Wp, C1)   padded input slab (bf16), resident per batch
    # w_ref:     (K*K*C1, TC)      BN-scale-folded conv weights (bf16)
    # shift_ref: (1, TC)           folded BN shift (f32)
    # o_ref:     (1, TH, Wo, TC)   output row/Cout tile
    _, th, wo, tc = o_ref.shape
    c1 = x_ref.shape[3]

    hi = pl.program_id(1)
    row0 = pl.multiple_of(hi * th, th)
    # Row window (TH output rows need TH + K - 1 padded input rows).
    x = x_ref[0, pl.ds(row0, th + k - 1), :, :]          # (TH+K-1, Wp, C1)

    # im2col: fuse all K*K taps into one MXU contraction of width K*K*C1.
    cols = []
    for kh in range(k):
        for kw in range(k):
            cols.append(x[kh:kh + th, kw:kw + wo, :])    # (TH, Wo, C1)
    patch = jnp.concatenate(cols, axis=-1).reshape(th * wo, k * k * c1)

    acc = jnp.dot(patch, w_ref[...],
                  preferred_element_type=jnp.float32)    # (TH*Wo, TC) f32

    y = acc + shift_ref[...]          # folded BN (scale already in weights)
    y = y * jax.nn.sigmoid(y)         # SiLU
    o_ref[...] = y.reshape(1, th, wo, tc).astype(o_ref.dtype)


def _pick_row_tile(h):
    # Prefer a tile that yields >= 2 row tiles (pipelining + megacore work).
    for cand in (128, 64, 32, 16, 8):
        if cand <= h // 2 and h % cand == 0:
            return cand
    return h


@functools.partial(jax.jit, static_argnames=("k", "p"))
def conv_bn_silu(x_nchw, w_oihw, gamma, beta, run_mean, run_var, *, k, p, eps=1e-5):
    """Forward of Conv: Conv2d(bias=False, s=1, g=1) -> BatchNorm2d(eval) -> SiLU."""
    # TODO(synk): stride != 1 and groups != 1 Conv2d configs are not implemented
    # in this kernel (the module defaults are s=1, g=1).
    B, C1, H, W = x_nchw.shape
    C2 = w_oihw.shape[0]
    K = k
    Ho, Wo = H, W                       # stride 1, "same" (autopad) output
    Hp, Wp = H + 2 * p, W + 2 * p

    TC = 128                            # lane width; Cout tile (use 256 for very wide layers on v6e/v7x)
    C2p = pl.cdiv(C2, TC) * TC          # lane-dense padded Cout
    TH = _pick_row_tile(Ho)             # output-row tile

    # ---- glue: layout, padding, BN folding (plain JAX) ----
    scale = gamma / jnp.sqrt(run_var + eps)                        # (C2,)
    shift = beta - run_mean * scale                                # (C2,)
    w_hwio = jnp.transpose(w_oihw, (2, 3, 1, 0)) * scale           # fold BN scale into weights
    w_flat = w_hwio.reshape(K * K * C1, C2)
    w_flat = jnp.pad(w_flat, ((0, 0), (0, C2p - C2))).astype(jnp.bfloat16)
    shift_p = jnp.pad(shift, (0, C2p - C2)).reshape(1, C2p).astype(jnp.float32)

    x_nhwc = jnp.transpose(x_nchw, (0, 2, 3, 1)).astype(jnp.bfloat16)
    x_pad = jnp.pad(x_nhwc, ((0, 0), (p, p), (p, p), (0, 0)))      # (B, Hp, Wp, C1)

    grid = (B, Ho // TH, C2p // TC)

    out_nhwc = pl.pallas_call(
        functools.partial(_conv_bn_silu_kernel, k=K),
        out_shape=jax.ShapeDtypeStruct((B, Ho, Wo, C2p), x_nchw.dtype),
        grid_spec=pltpu.PrefetchScalarGridSpec(
            num_scalar_prefetch=0,
            grid=grid,
            in_specs=[
                # Padded input slab: same block index across (hi, ci), so it
                # stays resident in VMEM and is only re-DMA'd when b changes.
                pl.BlockSpec((1, Hp, Wp, C1), lambda b, hi, ci: (b, 0, 0, 0)),
                # Flattened BN-scaled weights, per Cout tile.
                pl.BlockSpec((K * K * C1, TC), lambda b, hi, ci: (0, ci)),
                # Folded BN shift, per Cout tile.
                pl.BlockSpec((1, TC), lambda b, hi, ci: (0, ci)),
            ],
            out_specs=pl.BlockSpec((1, TH, Wo, TC),
                                   lambda b, hi, ci: (b, hi, 0, ci)),
        ),
        compiler_params=pltpu.CompilerParams(
            dimension_semantics=("parallel", "parallel", "parallel"),
            vmem_limit_bytes=48 * 1024 * 1024,   # within v7x 64 MiB/TC, > v5e 16 MiB default
        ),
    )(x_pad, w_flat, shift_p)

    out_nhwc = out_nhwc[..., :C2]                                  # drop Cout padding
    return jnp.transpose(out_nhwc, (0, 3, 1, 2))                   # NHWC -> NCHW


def _reference_f32(x, w, gamma, beta, run_mean, run_var, *, k, p, eps=1e-5):
    y = jax.lax.conv_general_dilated(
        x, w, window_strides=(1, 1), padding=[(p, p), (p, p)],
        dimension_numbers=("NCHW", "OIHW", "NCHW"))
    scale = (gamma / jnp.sqrt(run_var + eps)).reshape(1, -1, 1, 1)
    shift = (beta - run_mean * gamma / jnp.sqrt(run_var + eps)).reshape(1, -1, 1, 1)
    y = y * scale + shift
    return y * jax.nn.sigmoid(y)


def _reference_bf16(x, w, gamma, beta, run_mean, run_var, *, k, p, eps=1e-5):
    # Same numerics as the kernel: bf16 inputs/weights, f32 accumulation.
    scale = gamma / jnp.sqrt(run_var + eps)
    shift = (beta - run_mean * scale).reshape(1, -1, 1, 1)
    w_s = (w * scale[:, None, None, None]).astype(jnp.bfloat16)
    y = jax.lax.conv_general_dilated(
        x.astype(jnp.bfloat16), w_s, window_strides=(1, 1),
        padding=[(p, p), (p, p)],
        dimension_numbers=("NCHW", "OIHW", "NCHW"),
        preferred_element_type=jnp.float32)
    y = y + shift
    return y * jax.nn.sigmoid(y)


if __name__ == "__main__":
    # Conv(c1=4, c2=8, k=3, s=1, p=autopad(3)=1, g=1, act=True)
    B, C1, C2, H, W, K = 2, 4, 8, 16, 16, 3
    P = K // 2  # autopad

    key = jax.random.PRNGKey(0)
    kx, kw, kg, kb, km, kv = jax.random.split(key, 6)

    x = jax.random.normal(kx, (B, C1, H, W), jnp.float32)
    w = jax.random.normal(kw, (C2, C1, K, K), jnp.float32) * 0.1     # Conv2d weight, OIHW
    # BatchNorm2d params / running stats (eval-mode BN, folded into the kernel).
    gamma = jax.random.normal(kg, (C2,), jnp.float32) * 0.1 + 1.0
    beta = jax.random.normal(kb, (C2,), jnp.float32) * 0.1
    run_mean = jax.random.normal(km, (C2,), jnp.float32) * 0.1
    run_var = jnp.abs(jax.random.normal(kv, (C2,), jnp.float32)) * 0.1 + 0.5

    out = conv_bn_silu(x, w, gamma, beta, run_mean, run_var, k=K, p=P)
    out = jax.block_until_ready(out)
    assert out.shape == (B, C2, H, W)

    # Tight check against a reference with matched bf16-in / f32-accumulate numerics.
    ref16 = _reference_bf16(x, w, gamma, beta, run_mean, run_var, k=K, p=P)
    assert jnp.allclose(out, ref16, atol=5e-3, rtol=5e-3), \
        f"max|diff| vs bf16 ref = {float(jnp.max(jnp.abs(out - ref16)))}"

    # Loose sanity check against the pure-f32 module semantics (bf16 MXU inputs).
    ref32 = _reference_f32(x, w, gamma, beta, run_mean, run_var, k=K, p=P)
    assert jnp.allclose(out, ref32, atol=5e-2, rtol=5e-2), \
        f"max|diff| vs f32 ref = {float(jnp.max(jnp.abs(out - ref32)))}"

    print("KERNEL_OK")
</pallas_src>

<mosaic_0001>
module attributes {stable_mosaic.version = 11 : i64} {
  func.func @_conv_bn_silu_kernel(%arg0: i32, %arg1: i32, %arg2: i32, %arg3: memref<1x18x18x4xbf16, #tpu.memory_space<vmem>>, %arg4: memref<36x128xbf16, #tpu.memory_space<vmem>>, %arg5: memref<1x128xf32, #tpu.memory_space<vmem>>, %arg6: memref<1x8x16x128xf32, #tpu.memory_space<vmem>>) attributes {dimension_semantics = [#tpu.dimension_semantics<parallel>, #tpu.dimension_semantics<parallel>, #tpu.dimension_semantics<parallel>], iteration_bounds = array<i64: 2, 2, 1>, scalar_prefetch = 0 : i64, scratch_operands = 0 : i64, tpu.core_type = #tpu.core_type<tc>, window_params = [{transform_indices = @transform_0, window_bounds = array<i64: 1, 18, 18, 4>}, {transform_indices = @transform_1, window_bounds = array<i64: 36, 128>}, {transform_indices = @transform_2, window_bounds = array<i64: 1, 128>}, {transform_indices = @transform_3, window_bounds = array<i64: 1, 8, 16, 128>}]} {
    %c8_i32 = arith.constant 8 : i32
    %0 = arith.muli %arg1, %c8_i32 : i32
    %1 = tpu.assume_multiple %0, 8 : i32
    %c0 = arith.constant 0 : index
    %2 = arith.index_cast %1 : i32 to index
    %c0_0 = arith.constant 0 : index
    %c0_1 = arith.constant 0 : index
    %3 = vector.load %arg3[%c0, %2, %c0_0, %c0_1] : memref<1x18x18x4xbf16, #tpu.memory_space<vmem>>, vector<1x10x18x4xbf16>
    %4 = vector.shape_cast %3 : vector<1x10x18x4xbf16> to vector<10x18x4xbf16>
    %5 = vector.extract_strided_slice %4 {offsets = [0, 0, 0], sizes = [8, 16, 4], strides = [1, 1, 1]} : vector<10x18x4xbf16> to vector<8x16x4xbf16>
    %6 = vector.extract_strided_slice %4 {offsets = [0, 1, 0], sizes = [8, 16, 4], strides = [1, 1, 1]} : vector<10x18x4xbf16> to vector<8x16x4xbf16>
    %7 = vector.extract_strided_slice %4 {offsets = [0, 2, 0], sizes = [8, 16, 4], strides = [1, 1, 1]} : vector<10x18x4xbf16> to vector<8x16x4xbf16>
    %8 = vector.extract_strided_slice %4 {offsets = [1, 0, 0], sizes = [8, 16, 4], strides = [1, 1, 1]} : vector<10x18x4xbf16> to vector<8x16x4xbf16>
    %9 = vector.extract_strided_slice %4 {offsets = [1, 1, 0], sizes = [8, 16, 4], strides = [1, 1, 1]} : vector<10x18x4xbf16> to vector<8x16x4xbf16>
    %10 = vector.extract_strided_slice %4 {offsets = [1, 2, 0], sizes = [8, 16, 4], strides = [1, 1, 1]} : vector<10x18x4xbf16> to vector<8x16x4xbf16>
    %11 = vector.extract_strided_slice %4 {offsets = [2, 0, 0], sizes = [8, 16, 4], strides = [1, 1, 1]} : vector<10x18x4xbf16> to vector<8x16x4xbf16>
    %12 = vector.extract_strided_slice %4 {offsets = [2, 1, 0], sizes = [8, 16, 4], strides = [1, 1, 1]} : vector<10x18x4xbf16> to vector<8x16x4xbf16>
    %13 = vector.extract_strided_slice %4 {offsets = [2, 2, 0], sizes = [8, 16, 4], strides = [1, 1, 1]} : vector<10x18x4xbf16> to vector<8x16x4xbf16>
    %14 = tpu.concatenate %5, %6, %7, %8, %9, %10, %11, %12, %13 in 2 : vector<8x16x4xbf16>, vector<8x16x4xbf16>, vector<8x16x4xbf16>, vector<8x16x4xbf16>, vector<8x16x4xbf16>, vector<8x16x4xbf16>, vector<8x16x4xbf16>, vector<8x16x4xbf16>, vector<8x16x4xbf16> -> vector<8x16x36xbf16>
    %15 = vector.shape_cast %14 : vector<8x16x36xbf16> to vector<128x36xbf16>
    %c0_2 = arith.constant 0 : index
    %c0_3 = arith.constant 0 : index
    %16 = vector.load %arg4[%c0_2, %c0_3] : memref<36x128xbf16, #tpu.memory_space<vmem>>, vector<36x128xbf16>
    %cst = arith.constant dense<0.000000e+00> : vector<128x128xf32>
    %17 = tpu.matmul %15, %16, %cst {dimension_numbers = #tpu.dot_dimension_numbers<[1], [0], [0], [1], [0, 0, 1, 1], [], []>} : vector<128x36xbf16>, vector<36x128xbf16>, vector<128x128xf32> -> vector<128x128xf32>
    %c0_4 = arith.constant 0 : index
    %c0_5 = arith.constant 0 : index
    %18 = vector.load %arg5[%c0_4, %c0_5] : memref<1x128xf32, #tpu.memory_space<vmem>>, vector<1x128xf32>
    %19 = vector.broadcast %18 : vector<1x128xf32> to vector<128x128xf32>
    %20 = arith.addf %17, %19 : vector<128x128xf32>
    %21 = arith.negf %20 : vector<128x128xf32>
    %22 = math.exp %21 : vector<128x128xf32>
    %cst_6 = arith.constant 1.000000e+00 : f32
    %23 = vector.broadcast %cst_6 : f32 to vector<128x128xf32>
    %24 = arith.addf %23, %22 : vector<128x128xf32>
    %25 = arith.divf %23, %24 : vector<128x128xf32>
    %26 = arith.mulf %20, %25 : vector<128x128xf32>
    %27 = vector.shape_cast %26 : vector<128x128xf32> to vector<1x8x16x128xf32>
    %c0_7 = arith.constant 0 : index
    %c0_8 = arith.constant 0 : index
    %c0_9 = arith.constant 0 : index
    %c0_10 = arith.constant 0 : index
    %28 = vector.load %arg6[%c0_7, %c0_8, %c0_9, %c0_10] : memref<1x8x16x128xf32, #tpu.memory_space<vmem>>, vector<1x8x16x128xf32>
    tpu.vector_store %arg6[%c0_7, %c0_8, %c0_9, %c0_10], %27 {strides = array<i32>} : memref<1x8x16x128xf32, #tpu.memory_space<vmem>>, vector<1x8x16x128xf32>,
    return
  }
  func.func @transform_0(%arg0: i32, %arg1: i32, %arg2: i32) -> (i32, i32, i32, i32) {
    %c0_i32 = arith.constant 0 : i32
    %c0_i32_0 = arith.constant 0 : i32
    %c0_i32_1 = arith.constant 0 : i32
    %c0_i32_2 = arith.constant 0 : i32
    return %arg0, %c0_i32, %c0_i32_0, %c0_i32_1 : i32, i32, i32, i32
  }
  func.func @transform_1(%arg0: i32, %arg1: i32, %arg2: i32) -> (i32, i32) {
    %c0_i32 = arith.constant 0 : i32
    %c0_i32_0 = arith.constant 0 : i32
    return %c0_i32, %arg2 : i32, i32
  }
  func.func @transform_2(%arg0: i32, %arg1: i32, %arg2: i32) -> (i32, i32) {
    %c0_i32 = arith.constant 0 : i32
    %c0_i32_0 = arith.constant 0 : i32
    return %c0_i32, %arg2 : i32, i32
  }
  func.func @transform_3(%arg0: i32, %arg1: i32, %arg2: i32) -> (i32, i32, i32, i32) {
    %c0_i32 = arith.constant 0 : i32
    %c0_i32_0 = arith.constant 0 : i32
    return %arg0, %arg1, %c0_i32, %arg2 : i32, i32, i32, i32
  }
}

</mosaic_0001>

<bundles_post_ra>
// kernel: conv_bn_silu.1
= control target key start
LH: loop header
LB: loop body
LE: loop exit
PB: predicated region body
PF: predicated region fallthrough
CT: control target
= control target key end

     0   :  { %s1489_s12 = smov 0   ;;  %s1491_s13 = smov 0   ;;  %s1929_s0 = inlined_call_operand.vmem [shape: bf16[2,18,18,4], index: 0, kind: input, shape index: {}]   ;;  %s1930_s1 = inlined_call_operand.vmem [shape: bf16[36,128], index: 1, kind: input, shape index: {}]   ;;  %s1931_s2 = inlined_call_operand.vmem [shape: f32[1,128], index: 2, kind: input, shape index: {}]   ;;  %s1932_s3 = inlined_call_operand.vmem [shape: f32[2,16,16,128], index: 3, kind: output, shape index: {}]  }
   0x1   :  { %s1493_s14 = smov 0   ;;  %s1495_s15 = smov 0  }
   0x2   :  { %s1497_s16 = smov 0  }
   0x3 LB: > { %s28_s17 = sadd.s32 1, %s1451_s14  ;;  %s32_s18 = sadd.s32 1, %s1455_s15  ;;  %s1459_s16 = sphi %s1497_s16, %s13_s16   ;;  %s1455_s15 = sphi %s1495_s15, %s1936_s15   ;;  %s1451_s14 = sphi %s1493_s14, %s1935_s14   ;;  %s1447_s13 = sphi %s1491_s13, %s1934_s13   ;;  %s1443_s12 = sphi %s1489_s12, %s1933_s12  }
   0x4   : > { %p30_p0 = scmp.ge.s32.totalorder %s28_s17, 2  ;;  %p1184_p1 = scmp.ge.s32.totalorder %s1459_s16, 1 }
   0x5   : > { %p177_p2 = scmp.lt.s32.totalorder %s1459_s16, 5 }
   0x6   : > { %s1938_s17 = smov (%p30_p0, %s28_s17), 0  ;;  %s1940_s18 = smov (!%p30_p0, %s32_s18), %s1455_s15 }
   0x7   : > { %p178_p3 = pnand %p1184_p1, %p177_p2  ;;  %p34_p4 = scmp.ge.s32.totalorder %s1940_s18, 2 }
   0x8   : > { %p216_p5 = scmp.lt.s32.totalorder (!%p178_p3), %s1447_s13, 1  ;;  %s1243_s19 = smul.u32 (!%p178_p3), 96, %s1443_s12  ;;  %vm454_vm0 = vcmask (!%p178_p3), 1046528   ;;  %vm341_vm1 = vsmask.f32 (!%p178_p3), 7424  ;;  %vm817_vm2 = vcmask (!%p178_p3), 1041408  }
   0x9   : > { %s1942_s18 = smov (%p34_p4, %s1940_s18), 0  ;;  %181 = sbr.rel (%p178_p3) target bundleno = 512 (0x200), region = 32 }
   0xa   : > { %s1461_s25 = smov (!%p178_p3), 12   ;;  %s1462_s26 = smov (!%p178_p3), 8   ;;  %vm637_vm3 = vcmask (!%p178_p3), 31744   ;;  %vm654_vm4 = vcmask (!%p178_p3), 64512   ;;  %vm688_vm5 = vcmask (!%p178_p3), 130048   ;;  %vm671_vm6 = vcmask (!%p178_p3), 97280  }
   0xb   : > { %s1463_s27 = smov (!%p178_p3), 4   ;;  %s1464_s28 = smov (!%p178_p3), 16   ;;  %vm705_vm7 = vcmask (!%p178_p3), 162816   ;;  %vm722_vm8 = vcmask (!%p178_p3), 195584   ;;  %vm739_vm9 = vcmask (!%p178_p3), 228352   ;;  %vm756_vm10 = vcmask (!%p178_p3), 261120  }
   0xc   : > { %s1465_s29 = smov (!%p178_p3), 20   ;;  %s1466_s30 = smov (!%p178_p3), 24   ;;  %vm800_vm11 = vcmask (!%p178_p3), 293888  }
   0xd   : > { %s1467_s8 = smov (!%p178_p3), 28   ;;  %s1468_s11 = smov (!%p178_p3), 32  }
   0xe   : > { %s1186_s21 = sshll.u32 (!%p178_p3), %s1443_s12, 3 }
   0xf   : > { %p231_p6 = scmp.lt.s32.totalorder (!%p178_p3), %s1186_s21, 15 }
  0x10   : > { %s1944_s13 = smov (!%p216_p5, %s1447_s13), 1 }
  0x11   : > { %s1285_s20 = smul.u32 216, %s1944_s13  ;;  %s1946_s21 = smov (!%p231_p6, %s1186_s21), 15 }
  0x12   : > { %s1187_s12 = sshll.u32 %s1946_s21, 1  ;;  %s1188_s22 = sshll.u32 %s1944_s13, 5 }
  0x13   : > { %s220_s23 = scalar_lea.vmem %s1929_s0, %s1285_s20 }
  0x14   : > { %s1528_s24 = scalar_lea.vmem %s220_s23, %s1243_s19  ;;  %s238_s23 = sadd.s32 %s1188_s22, %s1187_s12 }
  0x15   : > { %v1531_v0 = vld [vmem:[%s1528_s24 + $0x3c] sm:$0xff]   ;;  %v1534_v1 = vld [vmem:[%s1528_s24 + $0xc] sm:$0xff]   ;;  %v1337_v3 = vld [vmem:[%s1528_s24 + $0x38] ss:$0 sps:$4 sm:$0x11]  }
  0x16   : > { %508 = vrot.lane.b32.xlu1 %v1531_v0, %s1461_s25  ;;  %500 = vrot.lane.b32.xlu0 %v1534_v1, %s1461_s25  ;;  %v1541_v2 = vld [vmem:[%s1528_s24 + $0x30] sm:$0xff]   ;;  %v1545_v4 = vld [vmem:[%s1528_s24] sm:$0xff]   ;;  %v470_v5 = vrot.slane %v1531_v0, 1  ;;  %v468_v7 = vrot.slane %v1337_v3, 1  ;;  %v458_v9 = vrot.slane %v1534_v1, 1  ;;  %v355_v16 = vshrl.u32 %v1534_v1, 16 }
  0x17   : > { %v467_v6 = vrot.slane %v1541_v2, 1  ;;  %v1339_v8 = vld [vmem:[%s1528_s24 + $0x8] ss:$0 sps:$4 sm:$0x11]   ;;  %v455_v10 = vrot.slane %v1545_v4, 1  ;;  %v357_v17 = vshll.u32 %v1534_v1, 16 }
  0x18   : > { %v1340_v11 = vld [vmem:[%s1528_s24 + $0x44] ss:$0 sps:$4 sm:$0x11]   ;;  %v456_v13 = vrot.slane %v1339_v8, 1  ;;  %v343_v18 = vshrl.u32 %v1545_v4, 16  ;;  %v345_v22 = vshll.u32 %v1545_v4, 16 }
  0x19   : > { %v1554_v12 = vsel %vm454_vm0, %v467_v6, %v468_v7  ;;  %v1341_v14 = vld [vmem:[%s1528_s24 + $0x14] ss:$0 sps:$4 sm:$0x11]   ;;  %v471_v15 = vrot.slane %v1340_v11, 1  ;;  %v359_v24 = vrot.slane %v357_v17, 1  ;;  %v350_v25 = vshll.u32 %v1339_v8, 16 }
  0x1a   : > { %487 = vrot.lane.b32.xlu1 %v1554_v12, %s1462_s26  ;;  %v457_v19 = vsel %vm454_vm0, %v455_v10, %v456_v13  ;;  %v459_v20 = vrot.slane %v1341_v14, 1  ;;  %v362_v21 = vshll.u32 %v1341_v14, 16  ;;  %v403_v26 = vshrl.u32 %v1531_v0, 16  ;;  %v1578_v39 = vld [vmem:[%s1528_s24 + $0x48] sm:$0xff]   ;;  %v1585_v46 = vld [vmem:[%s1528_s24 + $0x18] sm:$0xff]   ;;  %v1603_v57 = vld [vmem:[%s1528_s24 + $0x60] sm:$0xff]  }
  0x1b   : > { %479 = vrot.lane.b32.xlu0 %v457_v19, %s1462_s26  ;;  %v1566_v23 = vsel %vm454_vm0, %v470_v5, %v471_v15  ;;  %v347_v29 = vrot.slane %v345_v22, 1  ;;  %v405_v30 = vshll.u32 %v1531_v0, 16  ;;  %v360_v31 = vor.u32 %v359_v24, %v355_v16  ;;  %v1344_v47 = vld [vmem:[%s1528_s24 + $0x50] ss:$0 sps:$4 sm:$0x11]  }
  0x1c   : > { %v1570_v27 = vsel %vm454_vm0, %v458_v9, %v459_v20  ;;  %v364_v28 = vrot.slane %v362_v21, 1  ;;  %v352_v32 = vrot.slane %v350_v25, 1  ;;  %v410_v33 = vshll.u32 %v1340_v11, 16  ;;  %v1345_v51 = vld [vmem:[%s1528_s24 + $0x20] ss:$0 sps:$4 sm:$0x11]  }
  0x1d   : > { %v391_v34 = vshrl.u32 %v1541_v2, 16  ;;  %v348_v35 = vor.u32 %v347_v29, %v343_v18  ;;  %v407_v36 = vrot.slane %v405_v30, 1  ;;  %v393_v37 = vshll.u32 %v1541_v2, 16  ;;  %v1611_v61 = vld [vmem:[%s1528_s24 + $0x6c] sm:$0xff]  }
  0x1e   : > { %489 = vrot.lane.b32.xlu1 %v1566_v23, %s1462_s26  ;;  %v398_v38 = vshll.u32 %v1337_v3, 16  ;;  %v365_v40 = vsel %vm341_vm1, %v360_v31, %v364_v28  ;;  %v412_v41 = vrot.slane %v410_v33, 1  ;;  %v417_v50 = vshll.u32 %v1578_v39, 16  ;;  %v1351_v3 = vld [vmem:[%s1528_s24 + $0x68] ss:$0 sps:$4 sm:$0x11]  }
  0x1f   : > { %481 = vrot.lane.b32.xlu0 %v1570_v27, %s1462_s26  ;;  %v353_v42 = vsel %vm341_vm1, %v348_v35, %v352_v32  ;;  %v408_v43 = vor.u32 %v407_v36, %v403_v26  ;;  %v395_v44 = vrot.slane %v393_v37, 1  ;;  %v369_v53 = vshll.u32 %v1585_v46, 16  ;;  %v1353_v15 = vld [vmem:[%s1528_s24 + $0x74] ss:$0 sps:$4 sm:$0x11]  }
  0x20   : > { %v400_v45 = vrot.slane %v398_v38, 1  ;;  %v415_v54 = vshrl.u32 %v1578_v39, 16  ;;  %v419_v55 = vrot.slane %v417_v50, 1  ;;  %v422_v56 = vshll.u32 %v1344_v47, 16  ;;  %v1656_v38 = vld [vmem:[%s1528_s24 + $0x54] sm:$0xff]  }
  0x21   : > { %v1590_v48 = vsel %vm341_vm1, %v408_v43, %v412_v41  ;;  %v396_v49 = vor.u32 %v395_v44, %v391_v34  ;;  %v374_v58 = vshll.u32 %v1345_v51, 16  ;;  %v367_v59 = vshrl.u32 %v1585_v46, 16  ;;  %v1662_v41 = vld [vmem:[%s1528_s24 + $0x24] sm:$0xff]   ;;  %v1349_v44 = vld [vmem:[%s1528_s24 + $0x2c] ss:$0 sps:$4 sm:$0x11]  }
  0x22   : > { %440 = vrot.lane.b32.xlu1 %v365_v40, %s1463_s27  ;;  %v371_v60 = vrot.slane %v369_v53, 1  ;;  %v420_v62 = vor.u32 %v419_v55, %v415_v54  ;;  %v424_v63 = vrot.slane %v422_v56, 1  ;;  %v520_v5 = vshrl.u32 %v1603_v57, 16  ;;  %v1355_v55 = vld [vmem:[%s1930_s1 + $0x8] sm:$0xff]  }
  0x23   : > { %438 = vrot.lane.b32.xlu0 %v353_v42, %s1463_s27  ;;  %v1596_v52 = vsel %vm341_vm1, %v396_v49, %v400_v45  ;;  %v522_v6 = vshll.u32 %v1603_v57, 16  ;;  %v376_v7 = vrot.slane %v374_v58, 1  ;;  %v547_v8 = vrot.slane %v1603_v57, 1  ;;  %v1348_v42 = vld [vmem:[%s1528_s24 + $0x5c] ss:$0 sps:$4 sm:$0x11]  }
  0x24   : > { %v372_v9 = vor.u32 %v371_v60, %v367_v59  ;;  %v527_v11 = vshll.u32 %v1351_v3, 16  ;;  %v591_v13 = vshrl.u32 %v1611_v61, 16  ;;  %v548_v14 = vrot.slane %v1351_v3, 1  ;;  %s1189_s24 = sshll.u32 %s238_s23, 3 }
  0x25   : > { %v524_v10 = vrot.slane %v522_v6, 1  ;;  %v593_v16 = vshll.u32 %v1611_v61, 16  ;;  %v618_v17 = vrot.slane %v1611_v61, 1  ;;  %v1626_v18 = vsel %vm341_vm1, %v420_v62, %v424_v63  ;;  %v1356_v62 = vld [vmem:[%s1930_s1 + $0x10] ss:$0 sps:$4 sm:$0x33]  }
  0x26   : > { %448 = vrot.lane.b32.xlu1 %v1590_v48, %s1463_s27  ;;  %v529_v20 = vrot.slane %v527_v11, 1  ;;  %v1630_v21 = vsel %vm454_vm0, %v547_v8, %v548_v14  ;;  %v598_v24 = vshll.u32 %v1353_v15, 16  ;;  %v619_v25 = vrot.slane %v1353_v15, 1 }
  0x27   : > { %446 = vrot.lane.b32.xlu0 %v1596_v52, %s1463_s27  ;;  %v525_v19 = vor.u32 %v524_v10, %v520_v5  ;;  %v595_v22 = vrot.slane %v593_v16, 1  ;;  %v1633_v26 = vsel %vm341_vm1, %v372_v9, %v376_v7  ;;  %v473_v32 = vrot.slane %v1578_v39, 1 }
  0x28   : > { %v600_v30 = vrot.slane %v598_v24, 1  ;;  %v1641_v31 = vsel %vm454_vm0, %v618_v17, %v619_v25  ;;  %v474_v33 = vrot.slane %v1344_v47, 1  ;;  %v461_v35 = vrot.slane %v1585_v46, 1 }
  0x29   : > { %v1636_v28 = vsel %vm341_vm1, %v525_v19, %v529_v20  ;;  %v596_v29 = vor.u32 %v595_v22, %v591_v13  ;;  %v462_v36 = vrot.slane %v1345_v51, 1  ;;  %v429_v43 = vshll.u32 %v1656_v38, 16 }
  0x2a   : > { %510 = vrot.lane.b32.xlu1 %v1578_v39, %s1461_s25  ;;  %v1653_v37 = vsel %vm454_vm0, %v473_v32, %v474_v33  ;;  %v381_v45 = vshll.u32 %v1662_v41, 16  ;;  %v427_v47 = vshrl.u32 %v1656_v38, 16  ;;  %v434_v50 = vshll.u32 %v1348_v42, 16 }
  0x2b   : > { %502 = vrot.lane.b32.xlu0 %v1585_v46, %s1461_s25  ;;  %v1647_v34 = vsel %vm341_vm1, %v596_v29, %v600_v30  ;;  %v431_v49 = vrot.slane %v429_v43, 1  ;;  %v379_v51 = vshrl.u32 %v1662_v41, 16  ;;  %v386_v54 = vshll.u32 %v1349_v44, 16 }
  0x2c   : > { %v383_v53 = vrot.slane %v381_v45, 1  ;;  %v436_v58 = vrot.slane %v434_v50, 1  ;;  %v819_v3 = vsel %vm817_vm2, %v1356_v62, 0  ;;  %v476_v6 = vrot.slane %v1656_v38, 1 }
  0x2d   : > { %v432_v56 = vor.u32 %v431_v49, %v427_v47  ;;  %v388_v60 = vrot.slane %v386_v54, 1  ;;  %v477_v7 = vrot.slane %v1348_v42, 1  ;;  %v464_v8 = vrot.slane %v1662_v41, 1 }
  0x2e   : > { %539 = vrot.lane.b32.xlu1 %v1590_v48, %s1464_s28  ;;  %v384_v59 = vor.u32 %v383_v53, %v379_v51  ;;  %v465_v9 = vrot.slane %v1349_v44, 1 }
  0x2f   : > { %531 = vrot.lane.b32.xlu0 %v365_v40, %s1464_s28  ;;  %v463_v40 = vsel %vm454_vm0, %v461_v35, %v462_v36  ;;  %v437_v63 = vsel %vm341_vm1, %v432_v56, %v436_v58  ;;  %v478_v10 = vsel %vm454_vm0, %v476_v6, %v477_v7 }
  0x30   : > { %v389_v5 = vsel %vm341_vm1, %v384_v59, %v388_v60  ;;  %v466_v11 = vsel %vm454_vm0, %v464_v8, %v465_v9 }
  0x32   : > { %541 = vrot.lane.b32.xlu1 %v1626_v18, %s1464_s28 }
  0x33   : > { %533 = vrot.lane.b32.xlu0 %v1633_v26, %s1464_s28 }
  0x36   : > { %558 = vrot.lane.b32.xlu1 %v1566_v23, %s1465_s29 }
  0x37   : > { %550 = vrot.lane.b32.xlu0 %v1570_v27, %s1465_s29  ;;  %v1354_v27 = vld [vmem:[%s1930_s1] sm:$0xff]  }
  0x38   : > { %1255 = vmatprep.subr.bf16.mxu0 %v1354_v27  ;;  %1277 = vmatprep.subr.bf16.mxu1 %v1354_v27 }
  0x39   : > { %1256 = vmatpush3.bf16.msra.mxu0 %v1354_v27  ;;  %1280 = vmatpush3.bf16.msra.mxu1 %v1354_v27 }
  0x3a   : > { %560 = vrot.lane.b32.xlu1 %v1653_v37, %s1465_s29  ;;  %1257 = vmatprep.subr.bf16.mxu0 %v1355_v55 }
  0x3b   : > { %552 = vrot.lane.b32.xlu0 %v463_v40, %s1465_s29  ;;  %1278 = vmatprep.subr.bf16.mxu1 %v1355_v55 }
  0x3d   : > { %1258 = vmatpush3.bf16.msra.mxu0 %v1355_v55  ;;  %1281 = vmatpush3.bf16.msra.mxu1 %v1355_v55 }
  0x3e   : > { %579 = vrot.lane.b32.xlu1 %v1578_v39, %s1466_s30  ;;  %1283 = vmatprep.subr.msk.bf16.mxu0 %vm817_vm2, %v1356_v62 }
  0x3f   : > { %571 = vrot.lane.b32.xlu0 %v1585_v46, %s1466_s30  ;;  %1284 = vmatprep.subr.msk.bf16.mxu1 %vm817_vm2, %v1356_v62 }
  0x41   : > { %1260 = vmatpush3.bf16.msra.mxu0 %v819_v3  ;;  %1282 = vmatpush3.bf16.msra.mxu1 %v819_v3 }
  0x42   : > { %581 = vrot.lane.b32.xlu1 %v1656_v38, %s1466_s30 }
  0x43   : > { %573 = vrot.lane.b32.xlu0 %v1662_v41, %s1466_s30 }
  0x46   : > { %610 = vrot.lane.b32.xlu1 %v1626_v18, %s1467_s8 }
  0x47   : > { %602 = vrot.lane.b32.xlu0 %v1633_v26, %s1467_s8 }
  0x4a   : > { %612 = vrot.lane.b32.xlu1 %v437_v63, %s1467_s8 }
  0x4b   : > { %604 = vrot.lane.b32.xlu0 %v389_v5, %s1467_s8 }
  0x4e   : > { %629 = vrot.lane.b32.xlu1 %v1653_v37, %s1468_s11 }
  0x4f   : > { %621 = vrot.lane.b32.xlu0 %v463_v40, %s1468_s11 }
  0x52   : > { %450 = vrot.lane.b32.xlu1 %v1626_v18, %s1463_s27 }
  0x53   : > { %442 = vrot.lane.b32.xlu0 %v1633_v26, %s1463_s27 }
  0x56   : > { %631 = vrot.lane.b32.xlu1 %v478_v10, %s1468_s11 }
  0x57   : > { %623 = vrot.lane.b32.xlu0 %v466_v11, %s1468_s11 }
  0x5a   : > { %452 = vrot.lane.b32.xlu1 %v437_v63, %s1463_s27 }
  0x5b   : > { %444 = vrot.lane.b32.xlu0 %v389_v5, %s1463_s27 }
  0x5e   : > { %491 = vrot.lane.b32.xlu1 %v1653_v37, %s1462_s26 }
  0x5f   : > { %483 = vrot.lane.b32.xlu0 %v463_v40, %s1462_s26 }
  0x62   : > { %493 = vrot.lane.b32.xlu1 %v478_v10, %s1462_s26 }
  0x63   : > { %485 = vrot.lane.b32.xlu0 %v466_v11, %s1462_s26  ;;  %s1875_s26 = scalar_lea.vmem %s1932_s3, %s1189_s24 }
  0x66   : > { %512 = vrot.lane.b32.xlu1 %v1656_v38, %s1461_s25 }
  0x67   : > { %504 = vrot.lane.b32.xlu0 %v1662_v41, %s1461_s25 }
  0x6a   : > { %514 = vrot.lane.b32.xlu1 %v1603_v57, %s1461_s25 }
  0x6b   : > { %506 = vrot.lane.b32.xlu0 %v1541_v2, %s1461_s25 }
  0x6e   : > { %543 = vrot.lane.b32.xlu1 %v437_v63, %s1464_s28 }
  0x6f   : > { %535 = vrot.lane.b32.xlu0 %v389_v5, %s1464_s28 }
  0x72   : > { %545 = vrot.lane.b32.xlu1 %v1636_v28, %s1464_s28 }
  0x73   : > { %537 = vrot.lane.b32.xlu0 %v1596_v52, %s1464_s28 }
  0x76   : > { %562 = vrot.lane.b32.xlu1 %v478_v10, %s1465_s29 }
  0x77   : > { %554 = vrot.lane.b32.xlu0 %v466_v11, %s1465_s29 }
  0x7a   : > { %564 = vrot.lane.b32.xlu1 %v1630_v21, %s1465_s29 }
  0x7b   : > { %556 = vrot.lane.b32.xlu0 %v1554_v12, %s1465_s29 }
  0x7e   : > { %583 = vrot.lane.b32.xlu1 %v1603_v57, %s1466_s30 }
  0x7f   : > { %575 = vrot.lane.b32.xlu0 %v1541_v2, %s1466_s30 }
  0x82   : > { %585 = vrot.lane.b32.xlu1 %v1611_v61, %s1466_s30 }
  0x83   : > { %577 = vrot.lane.b32.xlu0 %v1531_v0, %s1466_s30 }
  0x86   : > { %614 = vrot.lane.b32.xlu1 %v1636_v28, %s1467_s8 }
  0x87   : > { %606 = vrot.lane.b32.xlu0 %v1596_v52, %s1467_s8 }
  0x88   : > { %v509_v13 = vpop.permute.xlu1 %508  ;;  %v501_v14 = vpop.permute.xlu0 %500 }
  0x8a   : > { %616 = vrot.lane.b32.xlu1 %v1647_v34, %s1467_s8 }
  0x8b   : > { %608 = vrot.lane.b32.xlu0 %v1590_v48, %s1467_s8 }
  0x8c   : > { %v488_v57 = vpop.permute.xlu1 %487 }
  0x8d   : > { %v480_v15 = vpop.permute.xlu0 %479 }
  0x8e   : > { %633 = vrot.lane.b32.xlu1 %v1630_v21, %s1468_s11 }
  0x8f   : > { %625 = vrot.lane.b32.xlu0 %v1554_v12, %s1468_s11 }
  0x90   : > { %v490_v61 = vpop.permute.xlu1 %489 }
  0x91   : > { %v482_v16 = vpop.permute.xlu0 %481 }
  0x92   : > { %635 = vrot.lane.b32.xlu1 %v1641_v31, %s1468_s11 }
  0x93   : > { %627 = vrot.lane.b32.xlu0 %v1566_v23, %s1468_s11 }
  0x94   : > { %v441_v52 = vpop.permute.xlu1 %440 }
  0x95   : > { %v439_v17 = vpop.permute.xlu0 %438  ;;  %v641_v56 = vsel %vm637_vm3, %v1534_v1, %v441_v52 }
  0x96   : > { %v639_v34 = vsel %vm637_vm3, %v1545_v4, %v439_v17  ;;  %v658_v3 = vsel %vm654_vm4, %v641_v56, %v482_v16 }
  0x97   : > { %v656_v40 = vsel %vm654_vm4, %v639_v34, %v480_v15 }
  0x98   : > { %v449_v18 = vpop.permute.xlu1 %448  ;;  %v673_v44 = vsel %vm671_vm6, %v656_v40, %v501_v14 }
  0x99   : > { %v447_v48 = vpop.permute.xlu0 %446  ;;  %v649_v49 = vsel %vm637_vm3, %v1531_v0, %v449_v18 }
  0x9a   : > { %v647_v23 = vsel %vm637_vm3, %v1541_v2, %v447_v48  ;;  %v666_v60 = vsel %vm654_vm4, %v649_v49, %v490_v61 }
  0x9b   : > { %v664_v36 = vsel %vm654_vm4, %v647_v23, %v488_v57 }
  0x9c   : > { %v511_v19 = vpop.permute.xlu1 %510  ;;  %v681_v42 = vsel %vm671_vm6, %v664_v36, %v509_v13 }
  0x9d   : > { %v503_v20 = vpop.permute.xlu0 %502  ;;  %v683_v62 = vsel %vm671_vm6, %v666_v60, %v511_v19 }
  0x9e   : > { %v675_v1 = vsel %vm671_vm6, %v658_v3, %v503_v20 }
  0xa0   : > { %v540_v22 = vpop.permute.xlu1 %539 }
  0xa1   : > { %v532_v24 = vpop.permute.xlu0 %531  ;;  %v698_v2 = vsel %vm688_vm5, %v681_v42, %v540_v22 }
  0xa2   : > { %v690_v27 = vsel %vm688_vm5, %v673_v44, %v532_v24 }
  0xa4   : > { %v542_v21 = vpop.permute.xlu1 %541 }
  0xa5   : > { %v534_v25 = vpop.permute.xlu0 %533  ;;  %v700_v5 = vsel %vm688_vm5, %v683_v62, %v542_v21 }
  0xa6   : > { %v692_v8 = vsel %vm688_vm5, %v675_v1, %v534_v25 }
  0xa8   : > { %v559_v26 = vpop.permute.xlu1 %558 }
  0xa9   : > { %v551_v12 = vpop.permute.xlu0 %550  ;;  %v715_v4 = vsel %vm705_vm7, %v698_v2, %v559_v26 }
  0xaa   : > { %v707_v50 = vsel %vm705_vm7, %v690_v27, %v551_v12 }
  0xac   : > { %v561_v28 = vpop.permute.xlu1 %560 }
  0xad   : > { %v553_v29 = vpop.permute.xlu0 %552  ;;  %v717_v6 = vsel %vm705_vm7, %v700_v5, %v561_v28 }
  0xae   : > { %v709_v10 = vsel %vm705_vm7, %v692_v8, %v553_v29 }
  0xb0   : > { %v580_v30 = vpop.permute.xlu1 %579 }
  0xb1   : > { %v572_v32 = vpop.permute.xlu0 %571  ;;  %v732_v47 = vsel %vm722_vm8, %v715_v4, %v580_v30 }
  0xb2   : > { %v724_v54 = vsel %vm722_vm8, %v707_v50, %v572_v32 }
  0xb4   : > { %v582_v31 = vpop.permute.xlu1 %581 }
  0xb5   : > { %v574_v33 = vpop.permute.xlu0 %573  ;;  %v734_v9 = vsel %vm722_vm8, %v717_v6, %v582_v31 }
  0xb6   : > { %v726_v14 = vsel %vm722_vm8, %v709_v10, %v574_v33 }
  0xb8   : > { %v611_v35 = vpop.permute.xlu1 %610 }
  0xb9   : > { %v603_v37 = vpop.permute.xlu0 %602  ;;  %v749_v51 = vsel %vm739_vm9, %v732_v47, %v611_v35 }
  0xba   : > { %v741_v58 = vsel %vm739_vm9, %v724_v54, %v603_v37 }
  0xbc   : > { %v613_v43 = vpop.permute.xlu1 %612 }
  0xbd   : > { %v605_v45 = vpop.permute.xlu0 %604  ;;  %v751_v11 = vsel %vm739_vm9, %v734_v9, %v613_v43 }
  0xbe   : > { %v743_v15 = vsel %vm739_vm9, %v726_v14, %v605_v45 }
  0xc0   : > { %v630_v53 = vpop.permute.xlu1 %629 }
  0xc1   : > { %v766_v55 = vsel %vm756_vm10, %v749_v51, %v630_v53  ;;  %v622_v59 = vpop.permute.xlu0 %621 }
  0xc2   : > { %1269 = vmatprep.mubr.msk.bf16.mxu1 %vm800_vm11, %v766_v55  ;;  %v758_v0 = vsel %vm756_vm10, %v741_v58, %v622_v59 }
  0xc3   : > { %1261 = vmatprep.mubr.msk.bf16.mxu0 %vm800_vm11, %v758_v0 }
  0xc4   : > { %v451_v63 = vpop.permute.xlu1 %450 }
  0xc5   : > { %v443_v7 = vpop.permute.xlu0 %442  ;;  %v651_v40 = vsel %vm637_vm3, %v1578_v39, %v451_v63 }
  0xc6   : > { %v643_v2 = vsel %vm637_vm3, %v1585_v46, %v443_v7 }
  0xc8   : > { %v632_v13 = vpop.permute.xlu1 %631 }
  0xc9   : > { %v768_v57 = vsel %vm756_vm10, %v751_v11, %v632_v13  ;;  %v624_v61 = vpop.permute.xlu0 %623 }
  0xca   : > { %1270 = vmatmul.mubr.msk.bf16.vlgmr.msra.gmra.mrb[0].mxu1 %vm800_vm11, %v768_v57  ;;  %v760_v16 = vsel %vm756_vm10, %v743_v15, %v624_v61  ;;  %v1845_v61 = vld [vmem:[%s1931_s2] ss:$0 sm:$0xff] }
  0xcb   : > { %1262 = vmatmul.mubr.msk.bf16.vlgmr.msra.gmra.mrb[0].mxu0 %vm800_vm11, %v760_v16 }
  0xcc   : > { %v453_v52 = vpop.permute.xlu1 %452 }
  0xcd   : > { %v445_v17 = vpop.permute.xlu0 %444  ;;  %v653_v47 = vsel %vm637_vm3, %v1656_v38, %v453_v52 }
  0xce   : > { %v645_v54 = vsel %vm637_vm3, %v1662_v41, %v445_v17 }
  0xd0   : > { %v492_v18 = vpop.permute.xlu1 %491 }
  0xd1   : > { %v484_v48 = vpop.permute.xlu0 %483  ;;  %v668_v43 = vsel %vm654_vm4, %v651_v40, %v492_v18 }
  0xd2   : > { %v660_v45 = vsel %vm654_vm4, %v643_v2, %v484_v48 }
  0xd4   : > { %v494_v19 = vpop.permute.xlu1 %493 }
  0xd5   : > { %v486_v20 = vpop.permute.xlu0 %485  ;;  %v670_v51 = vsel %vm654_vm4, %v653_v47, %v494_v19 }
  0xd6   : > { %v662_v59 = vsel %vm654_vm4, %v645_v54, %v486_v20 }
  0xd8   : > { %v513_v22 = vpop.permute.xlu1 %512 }
  0xd9   : > { %v505_v24 = vpop.permute.xlu0 %504  ;;  %v685_v44 = vsel %vm671_vm6, %v668_v43, %v513_v22 }
  0xda   : > { %v677_v49 = vsel %vm671_vm6, %v660_v45, %v505_v24 }
  0xdc   : > { %v515_v21 = vpop.permute.xlu1 %514 }
  0xdd   : > { %v507_v25 = vpop.permute.xlu0 %506  ;;  %v687_v55 = vsel %vm671_vm6, %v670_v51, %v515_v21 }
  0xde   : > { %v679_v63 = vsel %vm671_vm6, %v662_v59, %v507_v25 }
  0xe0   : > { %v544_v26 = vpop.permute.xlu1 %543 }
  0xe1   : > { %v536_v12 = vpop.permute.xlu0 %535  ;;  %v702_v27 = vsel %vm688_vm5, %v685_v44, %v544_v26 }
  0xe2   : > { %v694_v53 = vsel %vm688_vm5, %v677_v49, %v536_v12 }
  0xe4   : > { %v546_v28 = vpop.permute.xlu1 %545 }
  0xe5   : > { %v538_v29 = vpop.permute.xlu0 %537  ;;  %v704_v60 = vsel %vm688_vm5, %v687_v55, %v546_v28 }
  0xe6   : > { %v696_v1 = vsel %vm688_vm5, %v679_v63, %v538_v29 }
  0xe8   : > { %v563_v30 = vpop.permute.xlu1 %562 }
  0xe9   : > { %v555_v32 = vpop.permute.xlu0 %554  ;;  %v719_v39 = vsel %vm705_vm7, %v702_v27, %v563_v30 }
  0xea   : > { %v711_v56 = vsel %vm705_vm7, %v694_v53, %v555_v32 }
  0xec   : > { %v565_v31 = vpop.permute.xlu1 %564 }
  0xed   : > { %v557_v23 = vpop.permute.xlu0 %556  ;;  %v721_v3 = vsel %vm705_vm7, %v704_v60, %v565_v31 }
  0xee   : > { %v713_v8 = vsel %vm705_vm7, %v696_v1, %v557_v23 }
  0xf0   : > { %v584_v33 = vpop.permute.xlu1 %583 }
  0xf1   : > { %v576_v34 = vpop.permute.xlu0 %575  ;;  %v736_v46 = vsel %vm722_vm8, %v719_v39, %v584_v33 }
  0xf2   : > { %v728_v0 = vsel %vm722_vm8, %v711_v56, %v576_v34 }
  0xf4   : > { %v586_v35 = vpop.permute.xlu1 %585 }
  0xf5   : > { %v578_v36 = vpop.permute.xlu0 %577  ;;  %v738_v6 = vsel %vm722_vm8, %v721_v3, %v586_v35 }
  0xf6   : > { %v730_v11 = vsel %vm722_vm8, %v713_v8, %v578_v36 }
  0xf8   : > { %v615_v37 = vpop.permute.xlu1 %614 }
  0xf9   : > { %v607_v42 = vpop.permute.xlu0 %606  ;;  %v753_v38 = vsel %vm739_vm9, %v736_v46, %v615_v37 }
  0xfa   : > { %v745_v41 = vsel %vm739_vm9, %v728_v0, %v607_v42 }
  0xfc   : > { %v617_v4 = vpop.permute.xlu1 %616 }
  0xfd   : > { %v609_v50 = vpop.permute.xlu0 %608  ;;  %v755_v9 = vsel %vm739_vm9, %v738_v6, %v617_v4 }
  0xfe   : > { %v747_v14 = vsel %vm739_vm9, %v730_v11, %v609_v50 }
 0x100   : > { %v634_v58 = vpop.permute.xlu1 %633 }
 0x101   : > { %v770_v62 = vsel %vm756_vm10, %v753_v38, %v634_v58  ;;  %v626_v5 = vpop.permute.xlu0 %625 }
 0x102   : > { %1273 = vmatprep.mubr.msk.bf16.mxu1 %vm800_vm11, %v770_v62  ;;  %v762_v7 = vsel %vm756_vm10, %v745_v41, %v626_v5 }
 0x103   : > { %1265 = vmatprep.mubr.msk.bf16.mxu0 %vm800_vm11, %v762_v7 }
 0x104   : > { %v636_v10 = vpop.permute.xlu1 %635 }
 0x105   : > { %v772_v13 = vsel %vm756_vm10, %v755_v9, %v636_v10  ;;  %v628_v57 = vpop.permute.xlu0 %627 }
 0x106   : > { %1274 = vmatmul.mubr.msk.bf16.gmra.mrb[4].mxu1 %vm800_vm11, %v772_v13  ;;  %v764_v15 = vsel %vm756_vm10, %v747_v14, %v628_v57 }
 0x107   : > { %1266 = vmatmul.mubr.msk.bf16.gmra.mrb[4].mxu0 %vm800_vm11, %v764_v15 }
 0x19d   : > { %v1271_v16 = vpop.f32.mrb[0].mxu1 }
 0x19e   : > { %v1848_v52 = vadd.f32 %v1271_v16, %v1845_v61  ;;  %v887_v17 = vpop.f32.mrb[1].mxu1  ;;  %v1263_v18 = vpop.f32.mrb[0].mxu0 }
 0x19f   : > { %v1851_v48 = vadd.f32 %v1845_v61, %v887_v17  ;;  %v1272_v19 = vpop.f32.mrb[2].mxu1  ;;  %v1854_v20 = vadd.f32 %v1263_v18, %v1845_v61  ;;  %v855_v24 = vpop.f32.mrb[1].mxu0 }
 0x1a0   : > { %v1235_v22 = vmul.f32 -1.442695, %v1848_v52  ;;  %v1858_v21 = vadd.f32 %v1272_v19, %v1845_v61  ;;  %v890_v25 = vpop.f32.mrb[3].mxu1  ;;  %v856_v26 = vadd.f32 %v1845_v61, %v855_v24  ;;  %v1264_v28 = vpop.f32.mrb[2].mxu0 }
 0x1a1   : > { %v1233_v12 = vmul.f32 -1.442695, %v1851_v48  ;;  %v1863_v29 = vadd.f32 %v1845_v61, %v890_v25  ;;  %v1227_v30 = vmul.f32 -1.442695, %v1854_v20  ;;  %v867_v32 = vadd.f32 %v1264_v28, %v1845_v61  ;;  %v858_v31 = vpop.f32.mrb[3].mxu0 }
 0x1a2   : > { %1357 = vpow2.f32 %v1235_v22  ;;  %v1225_v23 = vmul.f32 -1.442695, %v856_v26  ;;  %v1236_v33 = vmul.f32 -1.442695, %v1858_v21  ;;  %v859_v34 = vadd.f32 %v1845_v61, %v858_v31 }
 0x1a3   : > { %1359 = vpow2.f32 %v1233_v12  ;;  %v1228_v35 = vmul.f32 -1.442695, %v867_v32  ;;  %v1234_v37 = vmul.f32 -1.442695, %v1863_v29 }
 0x1a4   : > { %1361 = vpow2.f32 %v1227_v30  ;;  %v1226_v36 = vmul.f32 -1.442695, %v859_v34 }
 0x1a5   : > { %1363 = vpow2.f32 %v1225_v23 }
 0x1a6   : > { %1365 = vpow2.f32 %v1228_v35 }
 0x1a7   : > { %1367 = vpow2.f32 %v1236_v33 }
 0x1a8   : > { %1369 = vpow2.f32 %v1226_v36 }
 0x1a9   : > { %1371 = vpow2.f32 %v1234_v37 }
 0x1ac   : > { %v1358_v40 = vpop.eup %1357 }
 0x1ad   : > { %v1360_v42 = vpop.eup %1359  ;;  %v976_v43 = vadd.f32 1.0, %v1358_v40 }
 0x1ae   : > { %v1362_v2 = vpop.eup %1361  ;;  %v974_v44 = vadd.f32 1.0, %v1360_v42 }
 0x1af   : > { %v1364_v4 = vpop.eup %1363  ;;  %v968_v45 = vadd.f32 1.0, %v1362_v2  ;;  %1373 = vrcp.f32 %v976_v43 }
 0x1b0   : > { %v1366_v27 = vpop.eup %1365  ;;  %v966_v47 = vadd.f32 1.0, %v1364_v4  ;;  %1375 = vrcp.f32 %v974_v44 }
 0x1b1   : > { %v1368_v49 = vpop.eup %1367  ;;  %1377 = vrcp.f32 %v968_v45  ;;  %v969_v39 = vadd.f32 1.0, %v1366_v27 }
 0x1b2   : > { %v1370_v50 = vpop.eup %1369  ;;  %1379 = vrcp.f32 %v966_v47  ;;  %v977_v51 = vadd.f32 1.0, %v1368_v49 }
 0x1b3   : > { %v1372_v53 = vpop.eup %1371  ;;  %1381 = vrcp.f32 %v969_v39  ;;  %v967_v46 = vadd.f32 1.0, %v1370_v50 }
 0x1b4   : > { %1383 = vrcp.f32 %v977_v51  ;;  %v975_v54 = vadd.f32 1.0, %v1372_v53 }
 0x1b5   : > { %1385 = vrcp.f32 %v967_v46 }
 0x1b6   : > { %1387 = vrcp.f32 %v975_v54 }
 0x1b9   : > { %v1374_v55 = vpop.eup %1373 }
 0x1ba   : > { %v1376_v56 = vpop.eup %1375  ;;  %v1024_v38 = vmul.f32 %v1374_v55, %v1848_v52 }
 0x1bb   : > { %v1378_v58 = vpop.eup %1377  ;;  %v1022_v59 = vmul.f32 %v1376_v56, %v1851_v48 }
 0x1bc   : > { %v1380_v60 = vpop.eup %1379  ;;  %v1016_v0 = vmul.f32 %v1378_v58, %v1854_v20  ;;  %1040 = vst [vmem:[%s1875_s26 + $0x50] sm:$0xff] %v1024_v38 }
 0x1bd   : > { %v1382_v62 = vpop.eup %1381  ;;  %v1014_v63 = vmul.f32 %v1380_v60, %v856_v26  ;;  %1038 = vst [vmem:[%s1875_s26 + $0x40] sm:$0xff] %v1022_v59 }
 0x1be   : > { %v1384_v3 = vpop.eup %1383  ;;  %1032 = vst [vmem:[%s1875_s26 + $0x10] sm:$0xff] %v1016_v0  ;;  %v1017_v41 = vmul.f32 %v1382_v62, %v867_v32 }
 0x1bf   : > { %v1386_v5 = vpop.eup %1385  ;;  %1030 = vst [vmem:[%s1875_s26] sm:$0xff] %v1014_v63  ;;  %v1025_v1 = vmul.f32 %v1384_v3, %v1858_v21 }
 0x1c0   : > { %v1388_v6 = vpop.eup %1387  ;;  %1033 = vst [vmem:[%s1875_s26 + $0x18] sm:$0xff] %v1017_v41  ;;  %v1015_v7 = vmul.f32 %v1386_v5, %v859_v34 }
 0x1c1   : > { %1041 = vst [vmem:[%s1875_s26 + $0x58] sm:$0xff] %v1025_v1  ;;  %v1023_v8 = vmul.f32 %v1388_v6, %v1863_v29 }
 0x1c2   : > { %1031 = vst [vmem:[%s1875_s26 + $0x8] sm:$0xff] %v1015_v7 }
 0x1c3   : > { %1039 = vst [vmem:[%s1875_s26 + $0x48] sm:$0xff] %v1023_v8 }
 0x1d9   : > { %v1275_v9 = vpop.f32.mrb[4].mxu1 }
 0x1da   : > { %v912_v10 = vadd.f32 %v1275_v9, %v1845_v61  ;;  %v903_v11 = vpop.f32.mrb[5].mxu1  ;;  %v1267_v13 = vpop.f32.mrb[4].mxu0 }
 0x1db   : > { %v904_v14 = vadd.f32 %v1845_v61, %v903_v11  ;;  %v1276_v57 = vpop.f32.mrb[6].mxu1  ;;  %v880_v15 = vadd.f32 %v1267_v13, %v1845_v61  ;;  %v871_v52 = vpop.f32.mrb[5].mxu0 }
 0x1dc   : > { %v1239_v16 = vmul.f32 -1.442695, %v912_v10  ;;  %v1894_v17 = vadd.f32 %v1276_v57, %v1845_v61  ;;  %v906_v18 = vpop.f32.mrb[7].mxu1  ;;  %v872_v48 = vadd.f32 %v1845_v61, %v871_v52  ;;  %v1268_v20 = vpop.f32.mrb[6].mxu0 }
 0x1dd   : > { %v1237_v19 = vmul.f32 -1.442695, %v904_v14  ;;  %v1898_v22 = vadd.f32 %v1845_v61, %v906_v18  ;;  %v1231_v24 = vmul.f32 -1.442695, %v880_v15  ;;  %v883_v21 = vadd.f32 %v1268_v20, %v1845_v61  ;;  %v874_v25 = vpop.f32.mrb[7].mxu0 }
 0x1de   : > { %1389 = vpow2.f32 %v1239_v16  ;;  %v1229_v26 = vmul.f32 -1.442695, %v872_v48  ;;  %v1240_v12 = vmul.f32 -1.442695, %v1894_v17  ;;  %v875_v28 = vadd.f32 %v1845_v61, %v874_v25 }
 0x1df   : > { %1391 = vpow2.f32 %v1237_v19  ;;  %v1232_v29 = vmul.f32 -1.442695, %v883_v21  ;;  %v1238_v32 = vmul.f32 -1.442695, %v1898_v22 }
 0x1e0   : > { %1393 = vpow2.f32 %v1231_v24  ;;  %v1230_v30 = vmul.f32 -1.442695, %v875_v28 }
 0x1e1   : > { %1395 = vpow2.f32 %v1229_v26 }
 0x1e2   : > { %1397 = vpow2.f32 %v1232_v29 }
 0x1e3   : > { %1399 = vpow2.f32 %v1240_v12 }
 0x1e4   : > { %1401 = vpow2.f32 %v1230_v30 }
 0x1e5   : > { %1403 = vpow2.f32 %v1238_v32 }
 0x1e8   : > { %v1390_v31 = vpop.eup %1389 }
 0x1e9   : > { %v1392_v23 = vpop.eup %1391  ;;  %v980_v33 = vadd.f32 1.0, %v1390_v31 }
 0x1ea   : > { %v1394_v34 = vpop.eup %1393  ;;  %v978_v35 = vadd.f32 1.0, %v1392_v23 }
 0x1eb   : > { %v1396_v36 = vpop.eup %1395  ;;  %v972_v37 = vadd.f32 1.0, %v1394_v34  ;;  %1405 = vrcp.f32 %v980_v33 }
 0x1ec   : > { %v1398_v40 = vpop.eup %1397  ;;  %v970_v61 = vadd.f32 1.0, %v1396_v36  ;;  %1407 = vrcp.f32 %v978_v35 }
 0x1ed   : > { %v1400_v42 = vpop.eup %1399  ;;  %1409 = vrcp.f32 %v972_v37  ;;  %v973_v43 = vadd.f32 1.0, %v1398_v40 }
 0x1ee   : > { %v1402_v2 = vpop.eup %1401  ;;  %1411 = vrcp.f32 %v970_v61  ;;  %v981_v44 = vadd.f32 1.0, %v1400_v42 }
 0x1ef   : > { %v1404_v4 = vpop.eup %1403  ;;  %1413 = vrcp.f32 %v973_v43  ;;  %v971_v45 = vadd.f32 1.0, %v1402_v2 }
 0x1f0   : > { %1415 = vrcp.f32 %v981_v44  ;;  %v979_v27 = vadd.f32 1.0, %v1404_v4 }
 0x1f1   : > { %1417 = vrcp.f32 %v971_v45 }
 0x1f2   : > { %1419 = vrcp.f32 %v979_v27 }
 0x1f5   : > { %v1406_v47 = vpop.eup %1405 }
 0x1f6   : > { %v1408_v49 = vpop.eup %1407  ;;  %v1028_v39 = vmul.f32 %v1406_v47, %v912_v10 }
 0x1f7   : > { %v1410_v50 = vpop.eup %1409  ;;  %v1026_v51 = vmul.f32 %v1408_v49, %v904_v14 }
 0x1f8   : > { %v1412_v53 = vpop.eup %1411  ;;  %v1020_v46 = vmul.f32 %v1410_v50, %v880_v15  ;;  %1044 = vst [vmem:[%s1875_s26 + $0x70] sm:$0xff] %v1028_v39 }
 0x1f9   : > { %v1414_v54 = vpop.eup %1413  ;;  %v1018_v55 = vmul.f32 %v1412_v53, %v872_v48  ;;  %1042 = vst [vmem:[%s1875_s26 + $0x60] sm:$0xff] %v1026_v51 }
 0x1fa   : > { %v1416_v56 = vpop.eup %1415  ;;  %1036 = vst [vmem:[%s1875_s26 + $0x30] sm:$0xff] %v1020_v46  ;;  %v1021_v38 = vmul.f32 %v1414_v54, %v883_v21 }
 0x1fb   : > { %v1418_v58 = vpop.eup %1417  ;;  %1034 = vst [vmem:[%s1875_s26 + $0x20] sm:$0xff] %v1018_v55  ;;  %v1029_v59 = vmul.f32 %v1416_v56, %v1894_v17 }
 0x1fc   : > { %v1420_v60 = vpop.eup %1419  ;;  %1037 = vst [vmem:[%s1875_s26 + $0x38] sm:$0xff] %v1021_v38  ;;  %v1019_v0 = vmul.f32 %v1418_v58, %v875_v28 }
 0x1fd   : > { %1045 = vst [vmem:[%s1875_s26 + $0x78] sm:$0xff] %v1029_v59  ;;  %v1027_v62 = vmul.f32 %v1420_v60, %v1898_v22 }
 0x1fe   : > { %1035 = vst [vmem:[%s1875_s26 + $0x28] sm:$0xff] %v1019_v0 }
 0x1ff   : > { %1043 = vst [vmem:[%s1875_s26 + $0x68] sm:$0xff] %v1027_v62 }
 0x200 PF: > { %s13_s16 = sadd.s32 1, %s1459_s16   ;;  %s1933_s12 = smov %s1451_s14 }
 0x201   : > { %p10_p7 = scmp.ge.s32.totalorder %s13_s16, 6   ;;  %s1934_s13 = smov %s1455_s15 }
 0x202   : > { %s1935_s14 = smov %s1938_s17  ;;  %s1936_s15 = smov %s1942_s18 }
 0x203   :  { %12 = sbr.rel (!%p10_p7) target bundleno = 3 (0x3), region = 69 }

</bundles_post_ra>
